<compile_context>
chip_gen: v6e
topology: v6e:2x2x1
jax: 0.10.0
libtpu: 0.0.40
codegen_flags: <defaults>
</compile_context>

<pallas_src>
import functools

import jax
import jax.numpy as jnp
from jax.experimental import pallas as pl
from jax.experimental.pallas import tpu as pltpu

LN_EPS = 1e-5


def tokenlearner_kernel(x_ref, gamma_ref, beta_ref, w12_ref, wout_ref, o_ref,
                        *, bb, n):
    """One grid step processes `bb` batch elements.

    x_ref     : (bb, N, C)  input pixels, channel-last, f32
    gamma/beta: (1, C)      LayerNorm affine params, f32
    w12_ref   : (S, C)      fused conv1*conv2 weight (f32 or bf16)
    wout_ref  : (C, C)      grouped out-conv as dense block-diag, transposed
    o_ref     : (bb, S, C)  output tokens, f32
    """
    mm_dtype = w12_ref.dtype
    c = x_ref.shape[-1]

    # (bb, N, C) -> (bb*N, C): leading-dim merge only, layout preserving.
    xf = x_ref[...].reshape(bb * n, c)

    # ---- LayerNorm over channels in f32 (torch default: biased var, eps in rsqrt).
    mean = jnp.mean(xf, axis=-1, keepdims=True)
    var = jnp.mean((xf - mean) ** 2, axis=-1, keepdims=True)
    sel = (xf - mean) * jax.lax.rsqrt(var + LN_EPS)
    sel = sel * gamma_ref[...] + beta_ref[...]                     # (bb*N, C)

    # ---- fused conv1+conv2 -> token logits, lane-dense (S, bb*N).
    logits = jax.lax.dot_general(
        w12_ref[...], sel.astype(mm_dtype), (((1,), (1,)), ((), ())),
        preferred_element_type=jnp.float32)                        # (S, bb*N)

    # ---- out-conv on the raw input: one MXU matmul for all bb*N pixels.
    feats = jnp.dot(xf.astype(mm_dtype), wout_ref[...],
                    preferred_element_type=jnp.float32).astype(mm_dtype)  # (bb*N, C)

    # ---- per-batch softmax over spatial positions + token pooling.
    # Static (unrolled) loop; slices are lane/sublane aligned because the
    # wrapper only picks bb > 1 when N % 128 == 0.
    for b in range(bb):
        lg = logits[:, b * n:(b + 1) * n]                          # (S, N)
        m = jnp.max(lg, axis=-1, keepdims=True)                    # (S, 1)
        p = jnp.exp(lg - m)                                        # (S, N)
        denom = jnp.sum(p, axis=-1, keepdims=True)                 # (S, 1)
        fb = feats[b * n:(b + 1) * n, :]                           # (N, C)
        raw = jnp.dot(p.astype(mm_dtype), fb,
                      preferred_element_type=jnp.float32)          # (S, C)
        # Normalize AFTER the contraction: scales S*C values, not N*S.
        o_ref[b] = (raw * pl.reciprocal(denom)).astype(o_ref.dtype)


def grouped_1x1_to_dense(w, groups):
    """PyTorch grouped Conv2d weight (C_out, C_in/groups) -> dense (C_out, C_in)."""
    cout, cin_g = w.shape
    gs_out = cout // groups
    dense = jnp.zeros((cout, cin_g * groups), w.dtype)
    for g in range(groups):
        dense = dense.at[g * gs_out:(g + 1) * gs_out,
                         g * cin_g:(g + 1) * cin_g].set(
                             w[g * gs_out:(g + 1) * gs_out])
    return dense


def _pick_block_batch(B, N, C, *, max_bb=8, max_block_bytes=2 << 20):
    """Largest batch-block that divides B, keeps >= 2 grid steps when B >= 2
    (v7x has 2 TensorCores), keeps per-batch lane slices aligned (N % 128 == 0
    whenever bb > 1), and keeps the x block small enough for VMEM."""
    best = 1
    for bb in range(1, min(B, max_bb) + 1):
        if B % bb:
            continue
        if B >= 2 and B // bb < 2:
            continue
        if bb > 1 and N % 128 != 0:
            continue
        if bb * N * C * 4 > max_block_bytes:
            continue
        best = bb
    return best


@functools.partial(jax.jit, static_argnames=("num_tokens", "use_bf16_matmul"))
def tokenlearner_v11(x_nchw, params, num_tokens, use_bf16_matmul=False):
    """x_nchw: (B, C, H, W) float32. Returns (B, num_tokens, C) float32."""
    B, C, H, W = x_nchw.shape
    N = H * W
    S = num_tokens
    mm_dtype = jnp.bfloat16 if use_bf16_matmul else jnp.float32

    # NCHW -> (B, N, C): layout plumbing only (done by XLA outside the kernel).
    x = jnp.transpose(x_nchw, (0, 2, 3, 1)).reshape(B, N, C)

    gamma = params["gamma"].reshape(1, C).astype(jnp.float32)
    beta = params["beta"].reshape(1, C).astype(jnp.float32)

    # Grouped 1x1 convs as dense block-diagonal matrices.  NOTE: wastes 8x MXU
    # FLOPs on zero blocks; fine for small C, use per-group matmuls if C grows.
    w1_dense = grouped_1x1_to_dense(params["w_conv1"], groups=8)     # (C, C)
    wout_dense = grouped_1x1_to_dense(params["w_out"], groups=8)     # (C, C)

    # Fuse conv1 and conv2 (no nonlinearity between them in this module):
    #   logits = (sel @ w1^T) @ w2^T == sel @ (w2 @ w1)^T
    w12 = (params["w_conv2"] @ w1_dense).astype(mm_dtype)            # (S, C)
    wout_t = wout_dense.T.astype(mm_dtype)                           # (C, C)

    bb = _pick_block_batch(B, N, C)
    grid = (B // bb,)

    kernel = functools.partial(tokenlearner_kernel, bb=bb, n=N)

    # VMEM budget: double-buffered x/out blocks + weights + in-kernel temps.
    # (For very large N*C, tile the spatial axis with an online-softmax
    #  accumulator on an extra "arbitrary" grid axis instead of holding all
    #  N in VMEM; not needed at these shapes.)
    vmem_need = (2 * bb * N * C * 4 + 2 * bb * S * C * 4
                 + 2 * (C * C + S * C + 2 * C) * 4
                 + 8 * bb * N * C * 4)
    vmem_limit = int(min(48 * 1024 * 1024, max(16 * 1024 * 1024, 2 * vmem_need)))

    out = pl.pallas_call(
        kernel,
        out_shape=jax.ShapeDtypeStruct((B, S, C), jnp.float32),
        grid=grid,
        in_specs=[
            pl.BlockSpec((bb, N, C), lambda i: (i, 0, 0)),
            pl.BlockSpec((1, C), lambda i: (0, 0)),
            pl.BlockSpec((1, C), lambda i: (0, 0)),
            pl.BlockSpec((S, C), lambda i: (0, 0)),
            pl.BlockSpec((C, C), lambda i: (0, 0)),
        ],
        out_specs=pl.BlockSpec((bb, S, C), lambda i: (i, 0, 0)),
        compiler_params=pltpu.CompilerParams(
            dimension_semantics=("parallel",),
            vmem_limit_bytes=vmem_limit),
    )(x, gamma, beta, w12, wout_t)
    return out


def reference_jax(x_nchw, params, num_tokens):
    """Pure-JAX reference mirroring the PyTorch forward (unfused convs)."""
    B, C, H, W = x_nchw.shape
    x = jnp.transpose(x_nchw, (0, 2, 3, 1))                   # (B,H,W,C)
    mean = jnp.mean(x, axis=-1, keepdims=True)
    var = jnp.mean((x - mean) ** 2, axis=-1, keepdims=True)
    sel = (x - mean) / jnp.sqrt(var + LN_EPS)
    sel = sel * params["gamma"] + params["beta"]               # (B,H,W,C)

    w1 = grouped_1x1_to_dense(params["w_conv1"], 8)            # (C,C)
    w2 = params["w_conv2"]                                     # (S,C)
    wo = grouped_1x1_to_dense(params["w_out"], 8)              # (C,C)

    h = jnp.einsum("bhwc,oc->bhwo", sel, w1)
    logits = jnp.einsum("bhwc,oc->bhwo", h, w2)                # (B,H,W,S)
    fmap = logits.reshape(B, H * W, num_tokens).transpose(0, 2, 1)   # (B,S,N)
    fmap = jax.nn.softmax(fmap, axis=-1)

    feats = jnp.einsum("bhwc,oc->bhwo", jnp.transpose(x_nchw, (0, 2, 3, 1)), wo)
    feats = feats.reshape(B, H * W, C)                         # (B,N,C)
    return jnp.einsum("bsn,bnc->bsc", fmap, feats)


if __name__ == "__main__":
    # Small shapes consistent with the module: C must be divisible by groups=8.
    B, C, H, W = 2, 32, 16, 16
    NUM_TOKENS = 8

    key = jax.random.PRNGKey(0)
    kx, kg, kb, k1, k2, ko = jax.random.split(key, 6)

    x = jax.random.normal(kx, (B, C, H, W), jnp.float32)

    params = {
        # LayerNorm affine (randomized deterministically to exercise the math)
        "gamma": 1.0 + 0.1 * jax.random.normal(kg, (C,), jnp.float32),
        "beta": 0.1 * jax.random.normal(kb, (C,), jnp.float32),
        # convs[0]: grouped 1x1 conv, weight (C_out, C_in/groups) = (C, C//8)
        "w_conv1": 0.2 * jax.random.normal(k1, (C, C // 8), jnp.float32),
        # convs[1]: 1x1 conv C -> num_tokens, weight (S, C)
        "w_conv2": 0.2 * jax.random.normal(k2, (NUM_TOKENS, C), jnp.float32),
        # out_convs: grouped 1x1 conv, weight (C, C//8)
        "w_out": 0.2 * jax.random.normal(ko, (C, C // 8), jnp.float32),
    }

    ref = reference_jax(x, params, NUM_TOKENS)

    # f32 MXU path: tight check against the unfused reference.
    out = jax.block_until_ready(tokenlearner_v11(x, params, NUM_TOKENS))
    assert out.shape == (B, NUM_TOKENS, C), out.shape
    assert jnp.allclose(out, ref, atol=1e-4, rtol=1e-4), \
        float(jnp.max(jnp.abs(out - ref)))

    # bf16 MXU inputs with f32 accumulation (v5e/v6e/v7x lever): looser check.
    out_bf16 = jax.block_until_ready(
        tokenlearner_v11(x, params, NUM_TOKENS, use_bf16_matmul=True))
    assert jnp.allclose(out_bf16, ref, atol=5e-2, rtol=5e-2), \
        float(jnp.max(jnp.abs(out_bf16 - ref)))

    print("KERNEL_OK")
</pallas_src>

<mosaic_0001>
module attributes {stable_mosaic.version = 11 : i64} {
  func.func @tokenlearner_kernel(%arg0: i32, %arg1: memref<1x256x32xf32, #tpu.memory_space<vmem>>, %arg2: memref<1x32xf32, #tpu.memory_space<vmem>>, %arg3: memref<1x32xf32, #tpu.memory_space<vmem>>, %arg4: memref<8x32xf32, #tpu.memory_space<vmem>>, %arg5: memref<32x32xf32, #tpu.memory_space<vmem>>, %arg6: memref<1x8x32xf32, #tpu.memory_space<vmem>>) attributes {dimension_semantics = [#tpu.dimension_semantics<parallel>], iteration_bounds = array<i64: 2>, scalar_prefetch = 0 : i64, scratch_operands = 0 : i64, tpu.core_type = #tpu.core_type<tc>, window_params = [{transform_indices = @transform_0, window_bounds = array<i64: 1, 256, 32>}, {pipeline_mode = #tpu.pipeline_mode<synchronous>, transform_indices = @transform_1, window_bounds = array<i64: 1, 32>}, {pipeline_mode = #tpu.pipeline_mode<synchronous>, transform_indices = @transform_2, window_bounds = array<i64: 1, 32>}, {pipeline_mode = #tpu.pipeline_mode<synchronous>, transform_indices = @transform_3, window_bounds = array<i64: 8, 32>}, {pipeline_mode = #tpu.pipeline_mode<synchronous>, transform_indices = @transform_4, window_bounds = array<i64: 32, 32>}, {transform_indices = @transform_5, window_bounds = array<i64: 1, 8, 32>}]} {
    %c0 = arith.constant 0 : index
    %c0_0 = arith.constant 0 : index
    %c0_1 = arith.constant 0 : index
    %0 = vector.load %arg1[%c0, %c0_0, %c0_1] : memref<1x256x32xf32, #tpu.memory_space<vmem>>, vector<1x256x32xf32>
    %1 = vector.shape_cast %0 : vector<1x256x32xf32> to vector<256x32xf32>
    %cst = arith.constant dense<0.000000e+00> : vector<256xf32>
    %2 = vector.multi_reduction <add>, %1, %cst [1] : vector<256x32xf32> to vector<256xf32>
    %3 = vector.shape_cast %2 : vector<256xf32> to vector<256x1xf32>
    %cst_2 = arith.constant 3.200000e+01 : f32
    %4 = vector.broadcast %cst_2 : f32 to vector<256x1xf32>
    %5 = arith.divf %3, %4 : vector<256x1xf32>
    %6 = vector.broadcast %5 : vector<256x1xf32> to vector<256x32xf32>
    %7 = arith.subf %1, %6 : vector<256x32xf32>
    %8 = arith.mulf %7, %7 : vector<256x32xf32>
    %cst_3 = arith.constant dense<0.000000e+00> : vector<256xf32>
    %9 = vector.multi_reduction <add>, %8, %cst_3 [1] : vector<256x32xf32> to vector<256xf32>
    %10 = vector.shape_cast %9 : vector<256xf32> to vector<256x1xf32>
    %cst_4 = arith.constant 3.200000e+01 : f32
    %11 = vector.broadcast %cst_4 : f32 to vector<256x1xf32>
    %12 = arith.divf %10, %11 : vector<256x1xf32>
    %13 = vector.broadcast %5 : vector<256x1xf32> to vector<256x32xf32>
    %14 = arith.subf %1, %13 : vector<256x32xf32>
    %cst_5 = arith.constant 9.99999974E-6 : f32
    %15 = vector.broadcast %cst_5 : f32 to vector<256x1xf32>
    %16 = arith.addf %12, %15 : vector<256x1xf32>
    %17 = math.rsqrt %16 : vector<256x1xf32>
    %18 = vector.broadcast %17 : vector<256x1xf32> to vector<256x32xf32>
    %19 = arith.mulf %14, %18 : vector<256x32xf32>
    %c0_6 = arith.constant 0 : index
    %c0_7 = arith.constant 0 : index
    %20 = vector.load %arg2[%c0_6, %c0_7] : memref<1x32xf32, #tpu.memory_space<vmem>>, vector<1x32xf32>
    %21 = vector.broadcast %20 : vector<1x32xf32> to vector<256x32xf32>
    %22 = arith.mulf %19, %21 : vector<256x32xf32>
    %c0_8 = arith.constant 0 : index
    %c0_9 = arith.constant 0 : index
    %23 = vector.load %arg3[%c0_8, %c0_9] : memref<1x32xf32, #tpu.memory_space<vmem>>, vector<1x32xf32>
    %24 = vector.broadcast %23 : vector<1x32xf32> to vector<256x32xf32>
    %25 = arith.addf %22, %24 : vector<256x32xf32>
    %c0_10 = arith.constant 0 : index
    %c0_11 = arith.constant 0 : index
    %26 = vector.load %arg4[%c0_10, %c0_11] : memref<8x32xf32, #tpu.memory_space<vmem>>, vector<8x32xf32>
    %cst_12 = arith.constant dense<0.000000e+00> : vector<8x256xf32>
    %27 = tpu.matmul %26, %25, %cst_12 {dimension_numbers = #tpu.dot_dimension_numbers<[1], [1], [0], [0], [0, 0, 1, 0], [], []>} : vector<8x32xf32>, vector<256x32xf32>, vector<8x256xf32> -> vector<8x256xf32>
    %c0_13 = arith.constant 0 : index
    %c0_14 = arith.constant 0 : index
    %28 = vector.load %arg5[%c0_13, %c0_14] : memref<32x32xf32, #tpu.memory_space<vmem>>, vector<32x32xf32>
    %cst_15 = arith.constant dense<0.000000e+00> : vector<256x32xf32>
    %29 = tpu.matmul %1, %28, %cst_15 {dimension_numbers = #tpu.dot_dimension_numbers<[1], [0], [0], [1], [0, 0, 1, 1], [], []>} : vector<256x32xf32>, vector<32x32xf32>, vector<256x32xf32> -> vector<256x32xf32>
    %cst_16 = arith.constant dense<0xFF800000> : vector<8xf32>
    %30 = vector.multi_reduction <maximumf>, %27, %cst_16 [1] : vector<8x256xf32> to vector<8xf32>
    %31 = vector.shape_cast %30 : vector<8xf32> to vector<8x1xf32>
    %32 = vector.broadcast %31 : vector<8x1xf32> to vector<8x256xf32>
    %33 = arith.subf %27, %32 : vector<8x256xf32>
    %34 = math.exp %33 : vector<8x256xf32>
    %cst_17 = arith.constant dense<0.000000e+00> : vector<8xf32>
    %35 = vector.multi_reduction <add>, %34, %cst_17 [1] : vector<8x256xf32> to vector<8xf32>
    %36 = vector.shape_cast %35 : vector<8xf32> to vector<8x1xf32>
    %cst_18 = arith.constant dense<0.000000e+00> : vector<8x32xf32>
    %37 = tpu.matmul %34, %29, %cst_18 {dimension_numbers = #tpu.dot_dimension_numbers<[1], [0], [0], [1], [0, 0, 1, 1], [], []>} : vector<8x256xf32>, vector<256x32xf32>, vector<8x32xf32> -> vector<8x32xf32>
    %38 = tpu.reciprocal %36 : vector<8x1xf32> -> vector<8x1xf32>
    %39 = vector.broadcast %38 : vector<8x1xf32> to vector<8x32xf32>
    %40 = arith.mulf %37, %39 : vector<8x32xf32>
    %c0_19 = arith.constant 0 : index
    %c0_20 = arith.constant 0 : index
    %c0_21 = arith.constant 0 : index
    %41 = vector.load %arg6[%c0_19, %c0_20, %c0_21] : memref<1x8x32xf32, #tpu.memory_space<vmem>>, vector<1x8x32xf32>
    %42 = vector.shape_cast %41 : vector<1x8x32xf32> to vector<8x32xf32>
    %43 = vector.shape_cast %40 : vector<8x32xf32> to vector<1x8x32xf32>
    tpu.vector_store %arg6[%c0_19, %c0_20, %c0_21], %43 {strides = array<i32>} : memref<1x8x32xf32, #tpu.memory_space<vmem>>, vector<1x8x32xf32>,
    return
  }
  func.func @transform_0(%arg0: i32) -> (i32, i32, i32) {
    %c0_i32 = arith.constant 0 : i32
    %c0_i32_0 = arith.constant 0 : i32
    %c0_i32_1 = arith.constant 0 : i32
    return %arg0, %c0_i32, %c0_i32_0 : i32, i32, i32
  }
  func.func @transform_1(%arg0: i32) -> (i32, i32) {
    %c0_i32 = arith.constant 0 : i32
    %c0_i32_0 = arith.constant 0 : i32
    %c0_i32_1 = arith.constant 0 : i32
    return %c0_i32, %c0_i32_0 : i32, i32
  }
  func.func @transform_2(%arg0: i32) -> (i32, i32) {
    %c0_i32 = arith.constant 0 : i32
    %c0_i32_0 = arith.constant 0 : i32
    %c0_i32_1 = arith.constant 0 : i32
    return %c0_i32, %c0_i32_0 : i32, i32
  }
  func.func @transform_3(%arg0: i32) -> (i32, i32) {
    %c0_i32 = arith.constant 0 : i32
    %c0_i32_0 = arith.constant 0 : i32
    %c0_i32_1 = arith.constant 0 : i32
    return %c0_i32, %c0_i32_0 : i32, i32
  }
  func.func @transform_4(%arg0: i32) -> (i32, i32) {
    %c0_i32 = arith.constant 0 : i32
    %c0_i32_0 = arith.constant 0 : i32
    %c0_i32_1 = arith.constant 0 : i32
    return %c0_i32, %c0_i32_0 : i32, i32
  }
  func.func @transform_5(%arg0: i32) -> (i32, i32, i32) {
    %c0_i32 = arith.constant 0 : i32
    %c0_i32_0 = arith.constant 0 : i32
    %c0_i32_1 = arith.constant 0 : i32
    return %arg0, %c0_i32, %c0_i32_0 : i32, i32, i32
  }
}

</mosaic_0001>

<bundles_post_ra>
// kernel: tokenlearner_v11.1
= control target key start
LH: loop header
LB: loop body
LE: loop exit
PB: predicated region body
PF: predicated region fallthrough
CT: control target
= control target key end

     0   :  { %10 = vsyncpa [#allocation3], 0  ;;  %s2643_s0 = inlined_call_operand.hbm [shape: f32[2,256,32], index: 0, kind: input, shape index: {}]   ;;  %s2644_s1 = inlined_call_operand.vmem [shape: f32[1,32], index: 1, kind: input, shape index: {}]   ;;  %s2645_s2 = inlined_call_operand.vmem [shape: f32[1,32], index: 2, kind: input, shape index: {}]   ;;  %s2646_s3 = inlined_call_operand.vmem [shape: f32[8,32], index: 3, kind: input, shape index: {}]   ;;  %s2647_s4 = inlined_call_operand.vmem [shape: f32[32,32], index: 4, kind: input, shape index: {}]   ;;  %s2648_s5 = inlined_call_operand.hbm [shape: f32[2,8,32], index: 5, kind: output, shape index: {}]  }
   0x1   :  { %12 = vsyncpa [#allocation3 + $0x1], 0 }
   0x2   :  { %13 = vsyncpa [#allocation4], 0 }
   0x3   :  { %15 = vsyncpa [#allocation4 + $0x1], 0  ;;  %s1924_s18 = smov 0   ;;  %s1926_s19 = smov 0  }
   0x4   :  { %s1928_s20 = smov 0   ;;  %s1930_s21 = smov 0  }
   0x5 LB: > { %s1945_s22 = sadd.s32 4294967295, %s1888_s21   ;;  %s1436_s23 = sadd.s32 4294967294, %s1888_s21   ;;  %s1888_s21 = sphi %s1930_s21, %s2699_s21   ;;  %s1884_s20 = sphi %s1928_s20, %s2698_s20   ;;  %s1880_s19 = sphi %s1926_s19, %s2697_s19   ;;  %s1876_s18 = sphi %s1924_s18, %s2696_s18  }
   0x6   : > { %s1949_s24 = sadd.s32 1, %s1888_s21   ;;  %s28_s25 = sadd.s32 1, %s1884_s20 }
   0x7   : > { %s25_s26 = ssub.s32 %s1888_s21, %s1949_s24  ;;  %p35_p0 = scmp.ne.s32.totalorder %s1884_s20, %s1880_s19 }
   0x8   : > { %p26_p1 = scmp.eq.s32.totalorder %s25_s26, 0  ;;  %p36_p2 = scmp.eq.s32.totalorder %s1888_s21, 0 }
   0x9   : > { %p41_p3 = scmp.ne.s32.totalorder %s1880_s19, %s1876_s18  ;;  %p42_p4 = scmp.eq.s32.totalorder %s1945_s22, 0 }
   0xa   : > { %s1961_s27 = scalar_select %p26_p1, %s1884_s20, %s28_s25  }
   0xb   : > { %p1963_p5 = por %p36_p2, %p35_p0  ;;  %p1967_p6 = por %p42_p4, %p41_p3 }
   0xc   : > { %p149_p7 = scmp.eq.s32.totalorder %s1945_s22, 1  ;;  %p155_p8 = scmp.eq.s32.totalorder %s1436_s23, 1 }
   0xd   : > { %s2664_s29 = scalar_select %p1967_p6, 1, 0 }
   0xe   : > { %p1690_p10 = scmp.lt.s32.totalorder %s1888_s21, 2  ;;  %p1974_p11 = por %p149_p7, %p35_p0 }
   0xf   : > { %p1978_p12 = por %p155_p8, %p41_p3  ;;  %s187_s7 = sand.u32 1, %s1884_s20  }
  0x10   : > { %s2665_s30 = scalar_select %p1974_p11, 1, 0 }
  0x11   : > { %s2666_s6 = scalar_select %p1978_p12, 1, 0 }
  0x12   : > { %s1516_s8 = sshll.u32 %s1888_s21, 12  ;;  %s1439_s9 = sshll.u32 %s187_s7, 8 }
  0x13   : > { %s1987_s12 = scalar_lea.hbm %s2643_s0, %s1516_s8  ;;  %s191_s13 = scalar_lea.vmem [#allocation2], %s1439_s9 }
  0x14   : > { %s198_s14 = sshll.u32 %s191_s13, 4  ;;  %p1991_p13 = pnand %p1690_p10, %p1963_p5  ;;  %s1995_s14 = int_to_ptr.vmem [resolvable:$true] %s198_s14 }
  0x15   : > { %s1997_s16 = scalar_lea.sflag [#allocation3], %s187_s7  ;;  %s1796_s17 = scalar_lea.hbm %s1987_s12, 4096 }
  0x16   : > { %p1797_p0 = scmp.ne.s32.totalorder %s1987_s12, %s1796_s17  ;;  %p1798_p1 = pneg %p1991_p13 }
  0x17   : > { %s1801_s26 = scalar_lea.hbm %s2643_s0, 8192  ;;  %p1802_p4 = scmp.lt.s32.totalorder %s1987_s12, %s2643_s0 }
  0x18   : > { %p1799_p2 = pnand %p1798_p1, %p1797_p0  ;;  %p1803_p5 = scmp.lt.s32.totalorder %s1801_s26, %s1796_s17 }
  0x1a   : > { %p1800_p3 = pneg %p1799_p2  ;;  %p1804_p7 = por %p1803_p5, %p1802_p4 }
  0x1c   : > { %p1805_p8 = pnand %p1804_p7, %p1800_p3 }
  0x1e   : > { %1808 = shalt.err (!%p1805_p8)
}
  0x1f   : > { %s1809_s7 = scalar_lea.vmem %s1995_s14, 4096  ;;  %s1890_s9 = smov [#allocation2]  }
  0x20   : > { %p1810_p10 = scmp.ne.s32.totalorder %s1995_s14, %s1809_s7  ;;  %s1814_s10 = sshll.u32 %s1890_s9, 4  ;;  %s1815_s10 = int_to_ptr.vmem [resolvable:$false] %s1814_s10 }
  0x21   : > { %s1816_s11 = scalar_lea.vmem %s1815_s10, 8192  ;;  %p1817_p2 = scmp.lt.s32.totalorder %s1995_s14, %s1815_s10 }
  0x22   : > { %p1812_p9 = pnand %p1810_p10, %p1798_p1  ;;  %p1818_p12 = scmp.lt.s32.totalorder %s1816_s11, %s1809_s7 }
  0x24   : > { %p1813_p0 = pneg %p1812_p9  ;;  %p1819_p11 = por %p1818_p12, %p1817_p2 }
  0x26   : > { %p1820_p6 = pnand %p1819_p11, %p1813_p0 }
  0x28   : > { %1823 = shalt.err (!%p1820_p6)
}
  0x29   : > { %s1891_s13 = smov 128   ;;  %s1892_s17 = smov 8  }
  0x2a   : > { %1685 = dma.hbm_to_vmem [thread:$0]  (!%p1991_p13), %s1987_s12, 4096, %s1995_s14, %s1997_s16, %s1891_s13, %s1891_s13, %s1892_s17  }
  0x2b   : > { %p1442_p9 = scmp.ge.s32.totalorder %s1888_s21, 1  ;;  %p206_p1 = scmp.lt.s32.totalorder %s1888_s21, 3 }
  0x2d   : > { %p207_p3 = pnand %p1442_p9, %p206_p1 }
  0x2f   : > { %210 = sbr.rel (%p207_p3) target bundleno = 1000 (0x3e8), region = 40 }
  0x34   : > { %s2021_s23 = sand.u32 1, %s1880_s19   ;;  %p2668_p6 = scmp.ne.s32.totalorder %s2664_s29, 0 }
  0x35   : > { %s1443_s25 = sshll.u32 %s2021_s23, 8  ;;  %s213_s26 = scalar_lea.sflag [#allocation3], %s2021_s23 }
  0x36   : > { %s2025_s28 = scalar_lea.vmem [#allocation2], %s1443_s25 }
  0x37   : > { %1867 = dma.done.wait (%p2668_p6), %s213_s26, 4096  }
  0x38   : > { %1869 = vsyncadd (%p2668_p6), %s213_s26, 4294963200  ;;  %vm275_vm0 = vcmask 261120   ;;  %v2032_v0 = vld [vmem:[%s2025_s28 + $0xf8] sm:$0xff]  ;;  %v2035_v1 = vld [vmem:[%s2025_s28 + $0xf0] sm:$0xff]  ;;  %s1513_s29 = sshll.u32 %s1945_s22, 7  ;;  %s1353_s7 = scalar_lea.sflag [#allocation4], %s2021_s23 }
  0x39   : > { %v2038_v2 = vld [vmem:[%s2025_s28 + $0x78] sm:$0xff]  ;;  %v369_v3 = vsel %vm275_vm0, %v2032_v0, 0.0  ;;  %v366_v4 = vsel %vm275_vm0, %v2035_v1, 0.0  ;;  %v2045_v5 = vld [vmem:[%s2025_s28 + $0x70] sm:$0xff]  ;;  %v2052_v8 = vld [vmem:[%s2025_s28 + $0xe8] sm:$0xff]  ;;  %s1364_s8 = scalar_lea.hbm %s2648_s5, %s1513_s29  ;;  %p2693_p12 = scmp.ne.s32.totalorder %s2665_s30, 0 }
  0x3a   : > { %370 = vadd.xlane.f32.xlu0 %v369_v3  ;;  %367 = vadd.xlane.f32.xlu1 %v366_v4  ;;  %v321_v6 = vsel %vm275_vm0, %v2038_v2, 0.0  ;;  %v318_v7 = vsel %vm275_vm0, %v2045_v5, 0.0  ;;  %v2055_v9 = vld [vmem:[%s2025_s28 + $0x68] sm:$0xff]  ;;  %v363_v10 = vsel %vm275_vm0, %v2052_v8, 0.0  ;;  %v2062_v12 = vld [vmem:[%s2025_s28 + $0xe0] sm:$0xff]  ;;  %v2077_v17 = vld [vmem:[%s2025_s28 + $0xd8] sm:$0xff] }
  0x3b   : > { %v315_v11 = vsel %vm275_vm0, %v2055_v9, 0.0  ;;  %v2065_v13 = vld [vmem:[%s2025_s28 + $0x60] sm:$0xff]  ;;  %v360_v15 = vsel %vm275_vm0, %v2062_v12, 0.0  ;;  %v2080_v18 = vld [vmem:[%s2025_s28 + $0x58] sm:$0xff]  ;;  %v357_v19 = vsel %vm275_vm0, %v2077_v17, 0.0  ;;  %v2087_v21 = vld [vmem:[%s2025_s28 + $0xd0] sm:$0xff] }
  0x3c   : > { %v2068_v14 = vld [vmem:[%s2025_s28] sm:$0xff]  ;;  %v312_v16 = vsel %vm275_vm0, %v2065_v13, 0.0  ;;  %v309_v20 = vsel %vm275_vm0, %v2080_v18, 0.0  ;;  %v2090_v22 = vld [vmem:[%s2025_s28 + $0x50] sm:$0xff]  ;;  %v354_v23 = vsel %vm275_vm0, %v2087_v21, 0.0  ;;  %v2097_v25 = vld [vmem:[%s2025_s28 + $0xc8] sm:$0xff] }
  0x3d   : > { %1630 = vmatprep.mubr.msk.f32.mxu1 %vm275_vm0, %v2068_v14  ;;  %v306_v24 = vsel %vm275_vm0, %v2090_v22, 0.0  ;;  %v2100_v26 = vld [vmem:[%s2025_s28 + $0x48] sm:$0xff]  ;;  %v351_v27 = vsel %vm275_vm0, %v2097_v25, 0.0  ;;  %v2107_v29 = vld [vmem:[%s2025_s28 + $0xc0] sm:$0xff]  ;;  %v2117_v33 = vld [vmem:[%s2025_s28 + $0xb8] sm:$0xff]  ;;  %v276_v63 = vsel %vm275_vm0, %v2068_v14, 0.0 }
  0x3e   : > { %322 = vadd.xlane.f32.xlu0 %v321_v6  ;;  %319 = vadd.xlane.f32.xlu1 %v318_v7  ;;  %v303_v28 = vsel %vm275_vm0, %v2100_v26, 0.0  ;;  %v2110_v30 = vld [vmem:[%s2025_s28 + $0x40] sm:$0xff]  ;;  %v348_v31 = vsel %vm275_vm0, %v2107_v29, 0.0  ;;  %v2120_v34 = vld [vmem:[%s2025_s28 + $0x38] sm:$0xff]  ;;  %v345_v35 = vsel %vm275_vm0, %v2117_v33, 0.0  ;;  %v2127_v37 = vld [vmem:[%s2025_s28 + $0xb0] sm:$0xff] }
  0x3f   : > { %v300_v32 = vsel %vm275_vm0, %v2110_v30, 0.0  ;;  %v297_v36 = vsel %vm275_vm0, %v2120_v34, 0.0  ;;  %v2130_v38 = vld [vmem:[%s2025_s28 + $0x30] sm:$0xff]  ;;  %v342_v39 = vsel %vm275_vm0, %v2127_v37, 0.0  ;;  %v2137_v41 = vld [vmem:[%s2025_s28 + $0xa8] sm:$0xff]  ;;  %v2147_v45 = vld [vmem:[%s2025_s28 + $0xa0] sm:$0xff] }
  0x40   : > { %v294_v40 = vsel %vm275_vm0, %v2130_v38, 0.0  ;;  %v2140_v42 = vld [vmem:[%s2025_s28 + $0x28] sm:$0xff]  ;;  %v339_v43 = vsel %vm275_vm0, %v2137_v41, 0.0  ;;  %v2150_v46 = vld [vmem:[%s2025_s28 + $0x20] sm:$0xff]  ;;  %v336_v47 = vsel %vm275_vm0, %v2147_v45, 0.0  ;;  %v2157_v49 = vld [vmem:[%s2025_s28 + $0x98] sm:$0xff] }
  0x41   : > { %v291_v44 = vsel %vm275_vm0, %v2140_v42, 0.0  ;;  %v288_v48 = vsel %vm275_vm0, %v2150_v46, 0.0  ;;  %v2160_v50 = vld [vmem:[%s2025_s28 + $0x18] sm:$0xff]  ;;  %v333_v51 = vsel %vm275_vm0, %v2157_v49, 0.0  ;;  %v2167_v53 = vld [vmem:[%s2025_s28 + $0x90] sm:$0xff]  ;;  %v2177_v57 = vld [vmem:[%s2025_s28 + $0x88] sm:$0xff] }
  0x42   : > { %364 = vadd.xlane.f32.xlu0 %v363_v10  ;;  %316 = vadd.xlane.f32.xlu1 %v315_v11  ;;  %v285_v52 = vsel %vm275_vm0, %v2160_v50, 0.0  ;;  %v2170_v54 = vld [vmem:[%s2025_s28 + $0x10] sm:$0xff]  ;;  %v330_v55 = vsel %vm275_vm0, %v2167_v53, 0.0  ;;  %v2180_v58 = vld [vmem:[%s2025_s28 + $0x8] sm:$0xff]  ;;  %v327_v59 = vsel %vm275_vm0, %v2177_v57, 0.0  ;;  %v2187_v61 = vld [vmem:[%s2025_s28 + $0x80] sm:$0xff] }
  0x43   : > { %v282_v56 = vsel %vm275_vm0, %v2170_v54, 0.0  ;;  %v279_v60 = vsel %vm275_vm0, %v2180_v58, 0.0  ;;  %v324_v62 = vsel %vm275_vm0, %v2187_v61, 0.0  ;;  %s1444_s28 = sshll.u32 %s2021_s23, 3  ;;  %s1893_s10 = smov [#allocation5]  }
  0x44   : > { %s242_s12 = scalar_lea.vmem [#allocation5], %s1444_s28  ;;  %s1828_s22 = sshll.u32 %s1893_s10, 4  ;;  %s1829_s22 = int_to_ptr.vmem [resolvable:$false] %s1828_s22 }
  0x45   : > { %s1366_s14 = sshll.u32 %s242_s12, 4  ;;  %s1830_s11 = scalar_lea.vmem %s1829_s22, 256  ;;  %s1367_s14 = int_to_ptr.vmem [resolvable:$true] %s1366_s14 }
  0x46   : > { %361 = vadd.xlane.f32.xlu0 %v360_v15  ;;  %313 = vadd.xlane.f32.xlu1 %v312_v16  ;;  %s1824_s9 = scalar_lea.vmem %s1367_s14, 128  ;;  %p1831_p5 = scmp.lt.s32.totalorder %s1367_s14, %s1829_s22 }
  0x47   : > { %p1825_p11 = scmp.ne.s32.totalorder %s1367_s14, %s1824_s9  ;;  %p1832_p7 = scmp.lt.s32.totalorder %s1830_s11, %s1824_s9 }
  0x49   : > { %p1826_p13 = pnand %p1825_p11, %p2693_p12  ;;  %p1833_p8 = por %p1832_p7, %p1831_p5 }
  0x4a   : > { %358 = vadd.xlane.f32.xlu0 %v357_v19  ;;  %310 = vadd.xlane.f32.xlu1 %v309_v20 }
  0x4b   : > { %p1827_p4 = pneg %p1826_p13 }
  0x4d   : > { %p1834_p10 = pnand %p1833_p8, %p1827_p4 }
  0x4e   : > { %355 = vadd.xlane.f32.xlu0 %v354_v23  ;;  %307 = vadd.xlane.f32.xlu1 %v306_v24 }
  0x52   : > { %352 = vadd.xlane.f32.xlu0 %v351_v27  ;;  %304 = vadd.xlane.f32.xlu1 %v303_v28 }
  0x56   : > { %349 = vadd.xlane.f32.xlu0 %v348_v31  ;;  %301 = vadd.xlane.f32.xlu1 %v300_v32 }
  0x5a   : > { %346 = vadd.xlane.f32.xlu0 %v345_v35  ;;  %298 = vadd.xlane.f32.xlu1 %v297_v36 }
  0x5e   : > { %343 = vadd.xlane.f32.xlu0 %v342_v39  ;;  %295 = vadd.xlane.f32.xlu1 %v294_v40 }
  0x62   : > { %340 = vadd.xlane.f32.xlu0 %v339_v43  ;;  %292 = vadd.xlane.f32.xlu1 %v291_v44 }
  0x66   : > { %337 = vadd.xlane.f32.xlu0 %v336_v47  ;;  %289 = vadd.xlane.f32.xlu1 %v288_v48 }
  0x6a   : > { %334 = vadd.xlane.f32.xlu0 %v333_v51  ;;  %286 = vadd.xlane.f32.xlu1 %v285_v52 }
  0x6e   : > { %331 = vadd.xlane.f32.xlu0 %v330_v55  ;;  %283 = vadd.xlane.f32.xlu1 %v282_v56 }
  0x72   : > { %328 = vadd.xlane.f32.xlu0 %v327_v59  ;;  %280 = vadd.xlane.f32.xlu1 %v279_v60 }
  0x76   : > { %325 = vadd.xlane.f32.xlu0 %v324_v62  ;;  %277 = vadd.xlane.f32.xlu1 %v276_v63 }
  0xc3   : > { %v371_v3 = vpop.xlane.xlu0 %370  ;;  %v368_v4 = vpop.xlane.xlu1 %367 }
  0xc4   : > { %v404_v6 = vmul.f32 0.03125, %v371_v3  ;;  %v403_v7 = vmul.f32 0.03125, %v368_v4 }
  0xc6   : > { %v2194_v10 = vsub.f32 %v2032_v0, %v404_v6  ;;  %v2197_v11 = vsub.f32 %v2035_v1, %v403_v7 }
  0xc7   : > { %v323_v15 = vpop.xlane.xlu0 %322  ;;  %v320_v16 = vpop.xlane.xlu1 %319 }
  0xc8   : > { %v388_v19 = vmul.f32 0.03125, %v323_v15  ;;  %v468_v20 = vmul.f32 %v2194_v10, %v2194_v10  ;;  %v387_v23 = vmul.f32 0.03125, %v320_v16  ;;  %v467_v24 = vmul.f32 %v2197_v11, %v2197_v11 }
  0xca   : > { %v2204_v27 = vsub.f32 %v2038_v2, %v388_v19  ;;  %v562_v28 = vsel %vm275_vm0, %v468_v20, 0.0  ;;  %v2208_v31 = vsub.f32 %v2045_v5, %v387_v23  ;;  %v559_v35 = vsel %vm275_vm0, %v467_v24, 0.0 }
  0xcb   : > { %563 = vadd.xlane.f32.xlu0 %v562_v28  ;;  %v365_v32 = vpop.xlane.xlu0 %364  ;;  %v317_v36 = vpop.xlane.xlu1 %316 }
  0xcc   : > { %v402_v39 = vmul.f32 0.03125, %v365_v32  ;;  %v386_v40 = vmul.f32 0.03125, %v317_v36  ;;  %v452_v43 = vmul.f32 %v2204_v27, %v2204_v27  ;;  %v451_v44 = vmul.f32 %v2208_v31, %v2208_v31 }
  0xce   : > { %v2216_v47 = vsub.f32 %v2052_v8, %v402_v39  ;;  %v2219_v48 = vsub.f32 %v2055_v9, %v386_v40  ;;  %v514_v51 = vsel %vm275_vm0, %v452_v43, 0.0  ;;  %v511_v56 = vsel %vm275_vm0, %v451_v44, 0.0 }
  0xcf   : > { %560 = vadd.xlane.f32.xlu0 %v559_v35  ;;  %v362_v52 = vpop.xlane.xlu0 %361  ;;  %515 = vadd.xlane.f32.xlu1 %v514_v51  ;;  %v314_v55 = vpop.xlane.xlu1 %313 }
  0xd0   : > { %v401_v59 = vmul.f32 0.03125, %v362_v52  ;;  %v466_v60 = vmul.f32 %v2216_v47, %v2216_v47  ;;  %v385_v62 = vmul.f32 0.03125, %v314_v55  ;;  %v450_v63 = vmul.f32 %v2219_v48, %v2219_v48 }
  0xd2   : > { %v2228_v3 = vsub.f32 %v2062_v12, %v401_v59  ;;  %v556_v4 = vsel %vm275_vm0, %v466_v60, 0.0  ;;  %v2232_v6 = vsub.f32 %v2065_v13, %v385_v62  ;;  %v508_v16 = vsel %vm275_vm0, %v450_v63, 0.0 }
  0xd3   : > { %557 = vadd.xlane.f32.xlu0 %v556_v4  ;;  %v359_v7 = vpop.xlane.xlu0 %358  ;;  %512 = vadd.xlane.f32.xlu1 %v511_v56  ;;  %v311_v15 = vpop.xlane.xlu1 %310 }
  0xd4   : > { %v400_v19 = vmul.f32 0.03125, %v359_v7  ;;  %v465_v20 = vmul.f32 %v2228_v3, %v2228_v3  ;;  %v384_v23 = vmul.f32 0.03125, %v311_v15  ;;  %v449_v24 = vmul.f32 %v2232_v6, %v2232_v6 }
  0xd6   : > { %v2240_v28 = vsub.f32 %v2077_v17, %v400_v19  ;;  %v553_v32 = vsel %vm275_vm0, %v465_v20, 0.0  ;;  %v2244_v35 = vsub.f32 %v2080_v18, %v384_v23  ;;  %v505_v40 = vsel %vm275_vm0, %v449_v24, 0.0 }
  0xd7   : > { %554 = vadd.xlane.f32.xlu0 %v553_v32  ;;  %v356_v36 = vpop.xlane.xlu0 %355  ;;  %509 = vadd.xlane.f32.xlu1 %v508_v16  ;;  %v308_v39 = vpop.xlane.xlu1 %307 }
  0xd8   : > { %v399_v43 = vmul.f32 0.03125, %v356_v36  ;;  %v464_v44 = vmul.f32 %v2240_v28, %v2240_v28  ;;  %v383_v51 = vmul.f32 0.03125, %v308_v39  ;;  %v448_v52 = vmul.f32 %v2244_v35, %v2244_v35 }
  0xda   : > { %v2252_v55 = vsub.f32 %v2087_v21, %v399_v43  ;;  %v550_v56 = vsel %vm275_vm0, %v464_v44, 0.0  ;;  %v2256_v59 = vsub.f32 %v2090_v22, %v383_v51  ;;  %v502_v63 = vsel %vm275_vm0, %v448_v52, 0.0 }
  0xdb   : > { %551 = vadd.xlane.f32.xlu0 %v550_v56  ;;  %v353_v60 = vpop.xlane.xlu0 %352  ;;  %506 = vadd.xlane.f32.xlu1 %v505_v40  ;;  %v305_v62 = vpop.xlane.xlu1 %304 }
  0xdc   : > { %v398_v4 = vmul.f32 0.03125, %v353_v60  ;;  %v463_v7 = vmul.f32 %v2252_v55, %v2252_v55  ;;  %v382_v15 = vmul.f32 0.03125, %v305_v62  ;;  %v447_v16 = vmul.f32 %v2256_v59, %v2256_v59 }
  0xde   : > { %v2264_v19 = vsub.f32 %v2097_v25, %v398_v4  ;;  %v547_v20 = vsel %vm275_vm0, %v463_v7, 0.0  ;;  %v2268_v23 = vsub.f32 %v2100_v26, %v382_v15  ;;  %v499_v36 = vsel %vm275_vm0, %v447_v16, 0.0 }
  0xdf   : > { %548 = vadd.xlane.f32.xlu0 %v547_v20  ;;  %v350_v24 = vpop.xlane.xlu0 %349  ;;  %503 = vadd.xlane.f32.xlu1 %v502_v63  ;;  %v302_v32 = vpop.xlane.xlu1 %301 }
  0xe0   : > { %v397_v39 = vmul.f32 0.03125, %v350_v24  ;;  %v462_v40 = vmul.f32 %v2264_v19, %v2264_v19  ;;  %v381_v43 = vmul.f32 0.03125, %v302_v32  ;;  %v446_v44 = vmul.f32 %v2268_v23, %v2268_v23 }
  0xe2   : > { %v2276_v51 = vsub.f32 %v2107_v29, %v397_v39  ;;  %v544_v52 = vsel %vm275_vm0, %v462_v40, 0.0  ;;  %v2280_v56 = vsub.f32 %v2110_v30, %v381_v43  ;;  %v496_v63 = vsel %vm275_vm0, %v446_v44, 0.0 }
  0xe3   : > { %545 = vadd.xlane.f32.xlu0 %v544_v52  ;;  %v347_v60 = vpop.xlane.xlu0 %346  ;;  %500 = vadd.xlane.f32.xlu1 %v499_v36  ;;  %v299_v62 = vpop.xlane.xlu1 %298 }
  0xe4   : > { %2669 = vst [vmem:[#allocation8_spill] sm:$0xff] %v2280_v56  ;;  %v396_v4 = vmul.f32 0.03125, %v347_v60  ;;  %v461_v7 = vmul.f32 %v2276_v51, %v2276_v51  ;;  %v380_v15 = vmul.f32 0.03125, %v299_v62  ;;  %v445_v16 = vmul.f32 %v2280_v56, %v2280_v56 }
  0xe6   : > { %v2288_v20 = vsub.f32 %v2117_v33, %v396_v4  ;;  %v541_v24 = vsel %vm275_vm0, %v461_v7, 0.0  ;;  %v2292_v32 = vsub.f32 %v2120_v34, %v380_v15  ;;  %v493_v40 = vsel %vm275_vm0, %v445_v16, 0.0 }
  0xe7   : > { %542 = vadd.xlane.f32.xlu0 %v541_v24  ;;  %v344_v36 = vpop.xlane.xlu0 %343  ;;  %497 = vadd.xlane.f32.xlu1 %v496_v63  ;;  %v296_v39 = vpop.xlane.xlu1 %295 }
  0xe8   : > { %2670 = vst [vmem:[#allocation9_spill] sm:$0xff] %v2292_v32  ;;  %v395_v43 = vmul.f32 0.03125, %v344_v36  ;;  %v460_v44 = vmul.f32 %v2288_v20, %v2288_v20  ;;  %v379_v52 = vmul.f32 0.03125, %v296_v39  ;;  %v444_v60 = vmul.f32 %v2292_v32, %v2292_v32 }
  0xea   : > { %v2300_v62 = vsub.f32 %v2127_v37, %v395_v43  ;;  %v538_v4 = vsel %vm275_vm0, %v460_v44, 0.0  ;;  %v2304_v7 = vsub.f32 %v2130_v38, %v379_v52  ;;  %v490_v16 = vsel %vm275_vm0, %v444_v60, 0.0 }
  0xeb   : > { %539 = vadd.xlane.f32.xlu0 %v538_v4  ;;  %v341_v63 = vpop.xlane.xlu0 %340  ;;  %494 = vadd.xlane.f32.xlu1 %v493_v40  ;;  %v293_v15 = vpop.xlane.xlu1 %292 }
  0xec   : > { %2671 = vst [vmem:[#allocation10_spill] sm:$0xff] %v2300_v62  ;;  %2672 = vst [vmem:[#allocation11_spill] sm:$0xff] %v2304_v7  ;;  %v394_v24 = vmul.f32 0.03125, %v341_v63  ;;  %v459_v36 = vmul.f32 %v2300_v62, %v2300_v62  ;;  %v378_v39 = vmul.f32 0.03125, %v293_v15  ;;  %v443_v43 = vmul.f32 %v2304_v7, %v2304_v7 }
  0xee   : > { %v2312_v32 = vsub.f32 %v2137_v41, %v394_v24  ;;  %v535_v44 = vsel %vm275_vm0, %v459_v36, 0.0  ;;  %v2316_v52 = vsub.f32 %v2140_v42, %v378_v39  ;;  %v487_v4 = vsel %vm275_vm0, %v443_v43, 0.0 }
  0xef   : > { %536 = vadd.xlane.f32.xlu0 %v535_v44  ;;  %v338_v40 = vpop.xlane.xlu0 %337  ;;  %491 = vadd.xlane.f32.xlu1 %v490_v16  ;;  %v290_v60 = vpop.xlane.xlu1 %289 }
  0xf0   : > { %2673 = vst [vmem:[#allocation12_spill] sm:$0xff] %v2312_v32  ;;  %2674 = vst [vmem:[#allocation13_spill] sm:$0xff] %v2316_v52  ;;  %v393_v63 = vmul.f32 0.03125, %v338_v40  ;;  %v458_v15 = vmul.f32 %v2312_v32, %v2312_v32  ;;  %v377_v62 = vmul.f32 0.03125, %v290_v60  ;;  %v442_v24 = vmul.f32 %v2316_v52, %v2316_v52 }
  0xf2   : > { %v2324_v7 = vsub.f32 %v2147_v45, %v393_v63  ;;  %v532_v36 = vsel %vm275_vm0, %v458_v15, 0.0  ;;  %v2328_v39 = vsub.f32 %v2150_v46, %v377_v62  ;;  %v484_v44 = vsel %vm275_vm0, %v442_v24, 0.0 }
  0xf3   : > { %533 = vadd.xlane.f32.xlu0 %v532_v36  ;;  %v335_v16 = vpop.xlane.xlu0 %334  ;;  %488 = vadd.xlane.f32.xlu1 %v487_v4  ;;  %v287_v43 = vpop.xlane.xlu1 %286  ;;  %v945_v4 = vld [vmem:[%s2647_s4 + $0x18] sm:$0xff] }
  0xf4   : > { %2675 = vst [vmem:[#allocation14_spill] sm:$0xff] %v2324_v7  ;;  %2676 = vst [vmem:[#allocation15_spill] sm:$0xff] %v2328_v39  ;;  %v392_v40 = vmul.f32 0.03125, %v335_v16  ;;  %v457_v60 = vmul.f32 %v2324_v7, %v2324_v7  ;;  %v376_v32 = vmul.f32 0.03125, %v287_v43  ;;  %v441_v63 = vmul.f32 %v2328_v39, %v2328_v39  ;;  %v944_v43 = vld [vmem:[%s2647_s4 + $0x10] sm:$0xff]  ;;  %1622 = vmatprep.subr.mxu1 %v945_v4 }
  0xf5   : > { %1623 = vmatpush3.msra.mxu1 %v945_v4 }
  0xf6   : > { %v2336_v52 = vsub.f32 %v2157_v49, %v392_v40  ;;  %v529_v62 = vsel %vm275_vm0, %v457_v60, 0.0  ;;  %v2340_v15 = vsub.f32 %v2160_v50, %v376_v32  ;;  %v481_v16 = vsel %vm275_vm0, %v441_v63, 0.0  ;;  %1624 = vmatprep.subr.mxu1 %v944_v43 }
  0xf7   : > { %530 = vadd.xlane.f32.xlu0 %v529_v62  ;;  %v332_v24 = vpop.xlane.xlu0 %331  ;;  %485 = vadd.xlane.f32.xlu1 %v484_v44  ;;  %v284_v36 = vpop.xlane.xlu1 %283 }
  0xf8   : > { %2677 = vst [vmem:[#allocation16_spill] sm:$0xff] %v2336_v52  ;;  %2678 = vst [vmem:[#allocation17_spill] sm:$0xff] %v2340_v15  ;;  %v391_v40 = vmul.f32 0.03125, %v332_v24  ;;  %v456_v60 = vmul.f32 %v2336_v52, %v2336_v52  ;;  %v375_v32 = vmul.f32 0.03125, %v284_v36  ;;  %v440_v39 = vmul.f32 %v2340_v15, %v2340_v15  ;;  %v943_v24 = vld [vmem:[%s2647_s4 + $0x8] sm:$0xff]  ;;  %1625 = vmatpush3.msra.mxu1 %v944_v43 }
  0xf9   : > { %1626 = vmatprep.subr.mxu1 %v943_v24 }
  0xfa   : > { %v2354_v62 = vsub.f32 %v2167_v53, %v391_v40  ;;  %v526_v44 = vsel %vm275_vm0, %v456_v60, 0.0  ;;  %v2358_v63 = vsub.f32 %v2170_v54, %v375_v32  ;;  %v478_v15 = vsel %vm275_vm0, %v440_v39, 0.0  ;;  %v942_v32 = vld [vmem:[%s2647_s4] sm:$0xff]  ;;  %1627 = vmatpush3.msra.mxu1 %v943_v24 }
  0xfb   : > { %527 = vadd.xlane.f32.xlu0 %v526_v44  ;;  %v329_v36 = vpop.xlane.xlu0 %328  ;;  %482 = vadd.xlane.f32.xlu1 %v481_v16  ;;  %v281_v52 = vpop.xlane.xlu1 %280 }
  0xfc   : > { %2679 = vst [vmem:[#allocation18_spill] sm:$0xff] %v2354_v62  ;;  %2680 = vst [vmem:[#allocation19_spill] sm:$0xff] %v2358_v63  ;;  %v390_v4 = vmul.f32 0.03125, %v329_v36  ;;  %v455_v40 = vmul.f32 %v2354_v62, %v2354_v62  ;;  %v374_v7 = vmul.f32 0.03125, %v281_v52  ;;  %v439_v60 = vmul.f32 %v2358_v63, %v2358_v63  ;;  %1628 = vmatprep.subr.mxu1 %v942_v32 }
  0xfd   : > { %1629 = vmatpush3.msra.mxu1 %v942_v32 }
  0xfe   : > { %v2372_v44 = vsub.f32 %v2177_v57, %v390_v4  ;;  %v523_v16 = vsel %vm275_vm0, %v455_v40, 0.0  ;;  %v2376_v39 = vsub.f32 %v2180_v58, %v374_v7  ;;  %v475_v36 = vsel %vm275_vm0, %v439_v60, 0.0  ;;  %1631 = vmatmul.mubr.msk.f32.vlgmr.msra.gmra.mxu1 %vm275_vm0, %v2180_v58 }
  0xff   : > { %524 = vadd.xlane.f32.xlu0 %v523_v16  ;;  %v326_v52 = vpop.xlane.xlu0 %325  ;;  %479 = vadd.xlane.f32.xlu1 %v478_v15  ;;  %v278_v43 = vpop.xlane.xlu1 %277  ;;  %v2475_v16 = vld [vmem:[%s2645_s2] ss:$0 sm:$0xff] }
 0x100   : > { %v389_v63 = vmul.f32 0.03125, %v326_v52  ;;  %v454_v62 = vmul.f32 %v2372_v44, %v2372_v44  ;;  %v373_v56 = vmul.f32 0.03125, %v278_v43  ;;  %v438_v4 = vmul.f32 %v2376_v39, %v2376_v39  ;;  %1633 = vmatprep.mubr.msk.f32.mxu1 %vm275_vm0, %v2170_v54  ;;  %v2469_v54 = vld [vmem:[%s2644_s1] ss:$0 sm:$0xff] }
 0x102   : > { %v2384_v7 = vsub.f32 %v2187_v61, %v389_v63  ;;  %v520_v24 = vsel %vm275_vm0, %v454_v62, 0.0  ;;  %v2388_v15 = vsub.f32 %v2068_v14, %v373_v56  ;;  %v472_v60 = vsel %vm275_vm0, %v438_v4, 0.0  ;;  %1634 = vmatmul.mubr.msk.f32.gmra.mxu1 %vm275_vm0, %v2160_v50 }
 0x103   : > { %521 = vadd.xlane.f32.xlu0 %v520_v24  ;;  %476 = vadd.xlane.f32.xlu1 %v475_v36 }
 0x104   : > { %v453_v40 = vmul.f32 %v2384_v7, %v2384_v7  ;;  %v437_v32 = vmul.f32 %v2388_v15, %v2388_v15  ;;  %1636 = vmatprep.mubr.msk.f32.mxu1 %vm275_vm0, %v2150_v46 }
 0x106   : > { %v517_v62 = vsel %vm275_vm0, %v453_v40, 0.0  ;;  %v469_v14 = vsel %vm275_vm0, %v437_v32, 0.0  ;;  %1637 = vmatmul.mubr.msk.f32.gmra.mxu1 %vm275_vm0, %v2140_v42 }
 0x107   : > { %518 = vadd.xlane.f32.xlu0 %v517_v62  ;;  %473 = vadd.xlane.f32.xlu1 %v472_v60 }
 0x108   : > { %1639 = vmatprep.mubr.msk.f32.mxu1 %vm275_vm0, %v2130_v38 }
 0x10a   : > { %1640 = vmatmul.mubr.msk.f32.gmra.mxu1 %vm275_vm0, %v2120_v34 }
 0x10b   : > { %470 = vadd.xlane.f32.xlu1 %v469_v14  ;;  %1642 = vmatprep.mubr.msk.f32.mxu1 %vm275_vm0, %v2110_v30 }
 0x10e   : > { %1643 = vmatmul.mubr.msk.f32.gmra.mxu1 %vm275_vm0, %v2100_v26 }
 0x10f   : > { %1645 = vmatprep.mubr.msk.f32.mxu1 %vm275_vm0, %v2090_v22 }
 0x112   : > { %1646 = vmatmul.mubr.msk.f32.gmra.mxu1 %vm275_vm0, %v2080_v18 }
 0x113   : > { %1648 = vmatprep.mubr.msk.f32.mxu1 %vm275_vm0, %v2065_v13 }
 0x116   : > { %1649 = vmatmul.mubr.msk.f32.gmra.mxu1 %vm275_vm0, %v2055_v9 }
 0x117   : > { %1651 = vmatprep.mubr.msk.f32.mxu1 %vm275_vm0, %v2045_v5 }
 0x11a   : > { %1652 = vmatmul.mubr.msk.f32.gmra.mxu1 %vm275_vm0, %v2038_v2  ;;  %v2446_v2 = vld [vmem:[%s2646_s3] sm:$0xff] }
 0x11b   : > { %1654 = vmatprep.mubr.msk.f32.mxu1 %vm275_vm0, %v2187_v61  ;;  %1549 = vmatprep.mubr.msk.f32.mxu0 %vm275_vm0, %v2446_v2 }
 0x11e   : > { %1655 = vmatmul.mubr.msk.f32.gmra.mxu1 %vm275_vm0, %v2177_v57 }
 0x11f   : > { %1657 = vmatprep.mubr.msk.f32.mxu1 %vm275_vm0, %v2167_v53 }
 0x122   : > { %1658 = vmatmul.mubr.msk.f32.gmra.mxu1 %vm275_vm0, %v2157_v49 }
 0x123   : > { %1660 = vmatprep.mubr.msk.f32.mxu1 %vm275_vm0, %v2147_v45 }
 0x126   : > { %1661 = vmatmul.mubr.msk.f32.gmra.mxu1 %vm275_vm0, %v2137_v41 }
 0x127   : > { %1663 = vmatprep.mubr.msk.f32.mxu1 %vm275_vm0, %v2127_v37 }
 0x12a   : > { %1664 = vmatmul.mubr.msk.f32.gmra.mxu1 %vm275_vm0, %v2117_v33 }
 0x12b   : > { %1666 = vmatprep.mubr.msk.f32.mxu1 %vm275_vm0, %v2107_v29 }
 0x12e   : > { %1667 = vmatmul.mubr.msk.f32.gmra.mxu1 %vm275_vm0, %v2097_v25 }
 0x12f   : > { %1669 = vmatprep.mubr.msk.f32.mxu1 %vm275_vm0, %v2087_v21 }
 0x132   : > { %1670 = vmatmul.mubr.msk.f32.gmra.mxu1 %vm275_vm0, %v2077_v17 }
 0x133   : > { %1672 = vmatprep.mubr.msk.f32.mxu1 %vm275_vm0, %v2062_v12 }
 0x136   : > { %1673 = vmatmul.mubr.msk.f32.gmra.mxu1 %vm275_vm0, %v2052_v8 }
 0x137   : > { %1675 = vmatprep.mubr.msk.f32.mxu1 %vm275_vm0, %v2035_v1 }
 0x13a   : > { %1676 = vmatmul.mubr.msk.f32.gmra.mxu1 %vm275_vm0, %v2032_v0 }
 0x154   : > { %v564_v5 = vpop.xlane.xlu0 %563 }
 0x155   : > { %v596_v9 = vmul.f32 0.03125, %v564_v5 }
 0x157   : > { %v628_v13 = vadd.f32 1e-05, %v596_v9 }
 0x158   : > { %v561_v18 = vpop.xlane.xlu0 %560  ;;  %v516_v21 = vpop.xlane.xlu1 %515 }
 0x159   : > { %1726 = vrsqrt.f32 %v628_v13  ;;  %v595_v22 = vmul.f32 0.03125, %v561_v18  ;;  %v580_v17 = vmul.f32 0.03125, %v516_v21 }
 0x15b   : > { %v627_v25 = vadd.f32 1e-05, %v595_v22  ;;  %v612_v26 = vadd.f32 1e-05, %v580_v17 }
 0x15c   : > { %v558_v12 = vpop.xlane.xlu0 %557  ;;  %v513_v29 = vpop.xlane.xlu1 %512 }
 0x15d   : > { %1728 = vrsqrt.f32 %v627_v25  ;;  %v594_v8 = vmul.f32 0.03125, %v558_v12  ;;  %v579_v30 = vmul.f32 0.03125, %v513_v29 }
 0x15e   : > { %1730 = vrsqrt.f32 %v612_v26 }
 0x15f   : > { %v626_v1 = vadd.f32 1e-05, %v594_v8  ;;  %v611_v33 = vadd.f32 1e-05, %v579_v30 }
 0x160   : > { %v555_v34 = vpop.xlane.xlu0 %554  ;;  %v510_v0 = vpop.xlane.xlu1 %509 }
 0x161   : > { %1732 = vrsqrt.f32 %v626_v1  ;;  %v593_v37 = vmul.f32 0.03125, %v555_v34  ;;  %v578_v38 = vmul.f32 0.03125, %v510_v0 }
 0x162   : > { %1734 = vrsqrt.f32 %v611_v33 }
 0x163   : > { %v625_v41 = vadd.f32 1e-05, %v593_v37  ;;  %v610_v42 = vadd.f32 1e-05, %v578_v38 }
 0x164   : > { %v552_v45 = vpop.xlane.xlu0 %551  ;;  %v507_v46 = vpop.xlane.xlu1 %506 }
 0x165   : > { %1736 = vrsqrt.f32 %v625_v41  ;;  %v592_v49 = vmul.f32 0.03125, %v552_v45  ;;  %v577_v50 = vmul.f32 0.03125, %v507_v46 }
 0x166   : > { %v1727_v53 = vpop.eup %1726  ;;  %1738 = vrsqrt.f32 %v610_v42 }
 0x167   : > { %v624_v57 = vadd.f32 1e-05, %v592_v49  ;;  %v609_v58 = vadd.f32 1e-05, %v577_v50  ;;  %v692_v61 = vmul.f32 %v1727_v53, %v2194_v10 }
 0x168   : > { %v549_v56 = vpop.xlane.xlu0 %548  ;;  %v504_v63 = vpop.xlane.xlu1 %503 }
 0x169   : > { %1740 = vrsqrt.f32 %v624_v57  ;;  %v591_v52 = vmul.f32 0.03125, %v549_v56  ;;  %v576_v36 = vmul.f32 0.03125, %v504_v63  ;;  %v731_v43 = vmul.f32 %v2469_v54, %v692_v61 }
 0x16a   : > { %v1729_v4 = vpop.eup %1728  ;;  %1742 = vrsqrt.f32 %v609_v58 }
 0x16b   : > { %v1731_v24 = vpop.eup %1730  ;;  %v623_v40 = vadd.f32 1e-05, %v591_v52  ;;  %v608_v60 = vadd.f32 1e-05, %v576_v36  ;;  %v770_v32 = vadd.f32 %v2475_v16, %v731_v43  ;;  %v691_v10 = vmul.f32 %v1729_v4, %v2197_v11 }
 0x16c   : > { %v546_v62 = vpop.xlane.xlu0 %545  ;;  %v501_v14 = vpop.xlane.xlu1 %500  ;;  %v676_v5 = vmul.f32 %v1731_v24, %v2204_v27 }
 0x16d   : > { %1744 = vrsqrt.f32 %v623_v40  ;;  %v590_v9 = vmul.f32 0.03125, %v546_v62  ;;  %v575_v13 = vmul.f32 0.03125, %v501_v14  ;;  %1517 = vmatprep.subr.msk.mxu0 %vm275_vm0, %v770_v32  ;;  %v730_v18 = vmul.f32 %v2469_v54, %v691_v10 }
 0x16e   : > { %v1733_v21 = vpop.eup %1732  ;;  %1746 = vrsqrt.f32 %v608_v60  ;;  %v715_v22 = vmul.f32 %v2469_v54, %v676_v5 }
 0x16f   : > { %v1735_v17 = vpop.eup %1734  ;;  %v622_v25 = vadd.f32 1e-05, %v590_v9  ;;  %v607_v26 = vadd.f32 1e-05, %v575_v13  ;;  %v769_v11 = vadd.f32 %v2475_v16, %v730_v18  ;;  %v690_v12 = vmul.f32 %v1733_v21, %v2216_v47 }
 0x170   : > { %v543_v29 = vpop.xlane.xlu0 %542  ;;  %v498_v27 = vpop.xlane.xlu1 %497  ;;  %v754_v8 = vadd.f32 %v2475_v16, %v715_v22  ;;  %v675_v30 = vmul.f32 %v1735_v17, %v2208_v31 }
 0x171   : > { %1748 = vrsqrt.f32 %v622_v25  ;;  %v589_v1 = vmul.f32 0.03125, %v543_v29  ;;  %v574_v33 = vmul.f32 0.03125, %v498_v27  ;;  %v729_v34 = vmul.f32 %v2469_v54, %v690_v12 }
 0x172   : > { %v1737_v0 = vpop.eup %1736  ;;  %1750 = vrsqrt.f32 %v607_v26  ;;  %1518 = vmatpush3.xpose.msk.msra.mxu0 %vm275_vm0, %v754_v8  ;;  %v714_v37 = vmul.f32 %v2469_v54, %v675_v30 }
 0x173   : > { %v1739_v38 = vpop.eup %1738  ;;  %v621_v41 = vadd.f32 1e-05, %v589_v1  ;;  %v606_v47 = vadd.f32 1e-05, %v574_v33  ;;  %1519 = vmatprep.subr.msk.mxu0 %vm275_vm0, %v769_v11  ;;  %v768_v42 = vadd.f32 %v2475_v16, %v729_v34  ;;  %v689_v31 = vmul.f32 %v1737_v0, %v2228_v3 }
 0x174   : > { %v540_v45 = vpop.xlane.xlu0 %539  ;;  %v495_v46 = vpop.xlane.xlu1 %494  ;;  %v753_v49 = vadd.f32 %v2475_v16, %v714_v37  ;;  %v674_v50 = vmul.f32 %v1739_v38, %v2219_v48 }
 0x175   : > { %1752 = vrsqrt.f32 %v621_v41  ;;  %v588_v53 = vmul.f32 0.03125, %v540_v45  ;;  %v573_v57 = vmul.f32 0.03125, %v495_v46  ;;  %v728_v58 = vmul.f32 %v2469_v54, %v689_v31 }
 0x176   : > { %v1741_v61 = vpop.eup %1740  ;;  %1754 = vrsqrt.f32 %v606_v47  ;;  %1520 = vmatpush3.xpose.msk.msra.mxu0 %vm275_vm0, %v753_v49  ;;  %v713_v56 = vmul.f32 %v2469_v54, %v674_v50 }
 0x177   : > { %v1743_v63 = vpop.eup %1742  ;;  %v620_v52 = vadd.f32 1e-05, %v588_v53  ;;  %v605_v3 = vadd.f32 1e-05, %v573_v57  ;;  %1521 = vmatprep.subr.msk.mxu0 %vm275_vm0, %v768_v42  ;;  %v767_v36 = vadd.f32 %v2475_v16, %v728_v58  ;;  %v688_v48 = vmul.f32 %v1741_v61, %v2240_v28 }
 0x178   : > { %v537_v43 = vpop.xlane.xlu0 %536  ;;  %v492_v4 = vpop.xlane.xlu1 %491  ;;  %v752_v24 = vadd.f32 %v2475_v16, %v713_v56  ;;  %v673_v40 = vmul.f32 %v1743_v63, %v2232_v6 }
 0x179   : > { %1756 = vrsqrt.f32 %v620_v52  ;;  %v587_v60 = vmul.f32 0.03125, %v537_v43  ;;  %v572_v32 = vmul.f32 0.03125, %v492_v4  ;;  %v727_v10 = vmul.f32 %v2469_v54, %v688_v48 }
 0x17a   : > { %v1745_v62 = vpop.eup %1744  ;;  %1758 = vrsqrt.f32 %v605_v3  ;;  %1522 = vmatpush3.xpose.msk.msra.mxu0 %vm275_vm0, %v752_v24  ;;  %v712_v14 = vmul.f32 %v2469_v54, %v673_v40  ;;  %v2681_v40 = vld [vmem:[#allocation8_spill] sm:$0xff] }
 0x17b   : > { %v1747_v5 = vpop.eup %1746  ;;  %v619_v9 = vadd.f32 1e-05, %v587_v60  ;;  %v604_v28 = vadd.f32 1e-05, %v572_v32  ;;  %1523 = vmatprep.subr.msk.mxu0 %vm275_vm0, %v767_v36  ;;  %v766_v13 = vadd.f32 %v2475_v16, %v727_v10  ;;  %v687_v6 = vmul.f32 %v1745_v62, %v2252_v55 }
 0x17c   : > { %v534_v18 = vpop.xlane.xlu0 %533  ;;  %v489_v21 = vpop.xlane.xlu1 %488  ;;  %v751_v22 = vadd.f32 %v2475_v16, %v712_v14  ;;  %v672_v17 = vmul.f32 %v1747_v5, %v2244_v35 }
 0x17d   : > { %1760 = vrsqrt.f32 %v619_v9  ;;  %v586_v25 = vmul.f32 0.03125, %v534_v18  ;;  %v571_v26 = vmul.f32 0.03125, %v489_v21  ;;  %v726_v11 = vmul.f32 %v2469_v54, %v687_v6  ;;  %v2682_v6 = vld [vmem:[#allocation10_spill] sm:$0xff] }
 0x17e   : > { %v1749_v12 = vpop.eup %1748  ;;  %1762 = vrsqrt.f32 %v604_v28  ;;  %1524 = vmatpush3.xpose.msk.msra.mxu0 %vm275_vm0, %v751_v22  ;;  %v711_v29 = vmul.f32 %v2469_v54, %v672_v17 }
 0x17f   : > { %v1751_v27 = vpop.eup %1750  ;;  %v618_v8 = vadd.f32 1e-05, %v586_v25  ;;  %v603_v55 = vadd.f32 1e-05, %v571_v26  ;;  %1525 = vmatprep.subr.msk.mxu0 %vm275_vm0, %v766_v13  ;;  %v765_v30 = vadd.f32 %v2475_v16, %v726_v11  ;;  %v686_v35 = vmul.f32 %v1749_v12, %v2264_v19  ;;  %v2683_v25 = vld [vmem:[#allocation9_spill] sm:$0xff] }
 0x180   : > { %v531_v1 = vpop.xlane.xlu0 %530  ;;  %v486_v33 = vpop.xlane.xlu1 %485  ;;  %v750_v34 = vadd.f32 %v2475_v16, %v711_v29  ;;  %v671_v0 = vmul.f32 %v1751_v27, %v2256_v59 }
 0x181   : > { %1764 = vrsqrt.f32 %v618_v8  ;;  %v585_v37 = vmul.f32 0.03125, %v531_v1  ;;  %v570_v38 = vmul.f32 0.03125, %v486_v33  ;;  %v725_v41 = vmul.f32 %v2469_v54, %v686_v35  ;;  %v2684_v33 = vld [vmem:[#allocation12_spill] sm:$0xff] }
 0x182   : > { %v1753_v47 = vpop.eup %1752  ;;  %1766 = vrsqrt.f32 %v603_v55  ;;  %1526 = vmatpush3.xpose.msk.msra.mxu0 %vm275_vm0, %v750_v34  ;;  %v710_v42 = vmul.f32 %v2469_v54, %v671_v0 }
 0x183   : > { %v1755_v31 = vpop.eup %1754  ;;  %v617_v45 = vadd.f32 1e-05, %v585_v37  ;;  %v602_v19 = vadd.f32 1e-05, %v570_v38  ;;  %1527 = vmatprep.subr.msk.mxu0 %vm275_vm0, %v765_v30  ;;  %v764_v46 = vadd.f32 %v2475_v16, %v725_v41  ;;  %v685_v59 = vmul.f32 %v1753_v47, %v2276_v51  ;;  %v2685_v41 = vld [vmem:[#allocation11_spill] sm:$0xff] }
 0x184   : > { %v528_v49 = vpop.xlane.xlu0 %527  ;;  %v483_v50 = vpop.xlane.xlu1 %482  ;;  %v749_v53 = vadd.f32 %v2475_v16, %v710_v42  ;;  %v670_v57 = vmul.f32 %v1755_v31, %v2268_v23 }
 0x185   : > { %1768 = vrsqrt.f32 %v617_v45  ;;  %v584_v58 = vmul.f32 0.03125, %v528_v49  ;;  %v569_v61 = vmul.f32 0.03125, %v483_v50  ;;  %v724_v56 = vmul.f32 %v2469_v54, %v685_v59 }
 0x186   : > { %v1757_v63 = vpop.eup %1756  ;;  %1770 = vrsqrt.f32 %v602_v19  ;;  %1528 = vmatpush3.xpose.msk.msra.mxu0 %vm275_vm0, %v749_v53  ;;  %v709_v52 = vmul.f32 %v2469_v54, %v670_v57  ;;  %v2686_v57 = vld [vmem:[#allocation14_spill] sm:$0xff] }
 0x187   : > { %v1759_v3 = vpop.eup %1758  ;;  %v616_v36 = vadd.f32 1e-05, %v584_v58  ;;  %v601_v51 = vadd.f32 1e-05, %v569_v61  ;;  %1529 = vmatprep.subr.msk.mxu0 %vm275_vm0, %v764_v46  ;;  %v763_v48 = vadd.f32 %v2475_v16, %v724_v56  ;;  %v684_v23 = vmul.f32 %v1757_v63, %v2288_v20  ;;  %v2687_v63 = vld [vmem:[#allocation13_spill] sm:$0xff] }
 0x188   : > { %v525_v43 = vpop.xlane.xlu0 %524  ;;  %v480_v4 = vpop.xlane.xlu1 %479  ;;  %v748_v24 = vadd.f32 %v2475_v16, %v709_v52  ;;  %v669_v60 = vmul.f32 %v1759_v3, %v2681_v40 }
 0x189   : > { %1772 = vrsqrt.f32 %v616_v36  ;;  %v583_v32 = vmul.f32 0.03125, %v525_v43  ;;  %v568_v10 = vmul.f32 0.03125, %v480_v4  ;;  %v723_v62 = vmul.f32 %v2469_v54, %v684_v23 }
 0x18a   : > { %v1761_v14 = vpop.eup %1760  ;;  %1774 = vrsqrt.f32 %v601_v51  ;;  %1530 = vmatpush3.xpose.msk.msra.mxu0 %vm275_vm0, %v748_v24  ;;  %v708_v5 = vmul.f32 %v2469_v54, %v669_v60  ;;  %v2688_v24 = vld [vmem:[#allocation16_spill] sm:$0xff] }
 0x18b   : > { %v1763_v9 = vpop.eup %1762  ;;  %v615_v28 = vadd.f32 1e-05, %v583_v32  ;;  %v600_v20 = vadd.f32 1e-05, %v568_v10  ;;  %1531 = vmatprep.subr.msk.mxu0 %vm275_vm0, %v763_v48  ;;  %v762_v13 = vadd.f32 %v2475_v16, %v723_v62  ;;  %v683_v18 = vmul.f32 %v1761_v14, %v2682_v6  ;;  %v2689_v32 = vld [vmem:[#allocation15_spill] sm:$0xff] }
 0x18c   : > { %v522_v21 = vpop.xlane.xlu0 %521  ;;  %v477_v22 = vpop.xlane.xlu1 %476  ;;  %v747_v17 = vadd.f32 %v2475_v16, %v708_v5  ;;  %v668_v26 = vmul.f32 %v1763_v9, %v2683_v25 }
 0x18d   : > { %1776 = vrsqrt.f32 %v615_v28  ;;  %v582_v11 = vmul.f32 0.03125, %v522_v21  ;;  %v567_v12 = vmul.f32 0.03125, %v477_v22  ;;  %v722_v29 = vmul.f32 %v2469_v54, %v683_v18  ;;  %v2691_v18 = vld [vmem:[#allocation17_spill] sm:$0xff] }
 0x18e   : > { %v1765_v27 = vpop.eup %1764  ;;  %1778 = vrsqrt.f32 %v600_v20  ;;  %1532 = vmatpush3.xpose.msk.msra.mxu0 %vm275_vm0, %v747_v17  ;;  %v707_v8 = vmul.f32 %v2469_v54, %v668_v26  ;;  %v2690_v20 = vld [vmem:[#allocation18_spill] sm:$0xff] }
 0x18f   : > { %v1767_v55 = vpop.eup %1766  ;;  %v614_v30 = vadd.f32 1e-05, %v582_v11  ;;  %v599_v35 = vadd.f32 1e-05, %v567_v12  ;;  %1533 = vmatprep.subr.msk.mxu0 %vm275_vm0, %v762_v13  ;;  %v761_v1 = vadd.f32 %v2475_v16, %v722_v29  ;;  %v682_v34 = vmul.f32 %v1765_v27, %v2684_v33  ;;  %v2692_v27 = vld [vmem:[#allocation19_spill] sm:$0xff] }
 0x190   : > { %v519_v0 = vpop.xlane.xlu0 %518  ;;  %v474_v37 = vpop.xlane.xlu1 %473  ;;  %v746_v38 = vadd.f32 %v2475_v16, %v707_v8  ;;  %v667_v47 = vmul.f32 %v1767_v55, %v2685_v41 }
 0x191   : > { %1780 = vrsqrt.f32 %v614_v30  ;;  %v581_v42 = vmul.f32 0.03125, %v519_v0  ;;  %v566_v31 = vmul.f32 0.03125, %v474_v37  ;;  %v721_v45 = vmul.f32 %v2469_v54, %v682_v34 }
 0x192   : > { %v1769_v19 = vpop.eup %1768  ;;  %1782 = vrsqrt.f32 %v599_v35  ;;  %1534 = vmatpush3.xpose.msk.msra.mxu0 %vm275_vm0, %v746_v38  ;;  %v706_v46 = vmul.f32 %v2469_v54, %v667_v47 }
 0x193   : > { %v1771_v59 = vpop.eup %1770  ;;  %v613_v49 = vadd.f32 1e-05, %v581_v42  ;;  %v598_v50 = vadd.f32 1e-05, %v566_v31  ;;  %1535 = vmatprep.subr.msk.mxu0 %vm275_vm0, %v761_v1  ;;  %v760_v53 = vadd.f32 %v2475_v16, %v721_v45  ;;  %v681_v58 = vmul.f32 %v1769_v19, %v2686_v57 }
 0x194   : > { %v471_v61 = vpop.xlane.xlu1 %470  ;;  %v745_v56 = vadd.f32 %v2475_v16, %v706_v46  ;;  %v666_v52 = vmul.f32 %v1771_v59, %v2687_v63 }
 0x195   : > { %1784 = vrsqrt.f32 %v613_v49  ;;  %v565_v3 = vmul.f32 0.03125, %v471_v61  ;;  %v720_v36 = vmul.f32 %v2469_v54, %v681_v58 }
 0x196   : > { %v1773_v51 = vpop.eup %1772  ;;  %1786 = vrsqrt.f32 %v598_v50  ;;  %1536 = vmatpush3.xpose.msk.msra.mxu0 %vm275_vm0, %v745_v56  ;;  %v705_v48 = vmul.f32 %v2469_v54, %v666_v52 }
 0x197   : > { %v1775_v23 = vpop.eup %1774  ;;  %v597_v43 = vadd.f32 1e-05, %v565_v3  ;;  %1537 = vmatprep.subr.msk.mxu0 %vm275_vm0, %v760_v53  ;;  %v759_v4 = vadd.f32 %v2475_v16, %v720_v36  ;;  %v680_v40 = vmul.f32 %v1773_v51, %v2688_v24 }
 0x198   : > { %v744_v60 = vadd.f32 %v2475_v16, %v705_v48  ;;  %v665_v10 = vmul.f32 %v1775_v23, %v2689_v32 }
 0x199   : > { %1788 = vrsqrt.f32 %v597_v43  ;;  %v719_v62 = vmul.f32 %v2469_v54, %v680_v40 }
 0x19a   : > { %v1777_v14 = vpop.eup %1776  ;;  %1538 = vmatpush3.xpose.msk.msra.mxu0 %vm275_vm0, %v744_v60  ;;  %v704_v5 = vmul.f32 %v2469_v54, %v665_v10 }
 0x19b   : > { %v1779_v9 = vpop.eup %1778  ;;  %1539 = vmatprep.subr.msk.mxu0 %vm275_vm0, %v759_v4  ;;  %v758_v28 = vadd.f32 %v2475_v16, %v719_v62  ;;  %v679_v13 = vmul.f32 %v1777_v14, %v2690_v20 }
 0x19c   : > { %v743_v6 = vadd.f32 %v2475_v16, %v704_v5  ;;  %v664_v21 = vmul.f32 %v1779_v9, %v2691_v18 }
 0x19d   : > { %v718_v22 = vmul.f32 %v2469_v54, %v679_v13 }
 0x19e   : > { %v1781_v17 = vpop.eup %1780  ;;  %1540 = vmatpush3.xpose.msk.msra.mxu0 %vm275_vm0, %v743_v6  ;;  %v703_v25 = vmul.f32 %v2469_v54, %v664_v21 }
 0x19f   : > { %v1783_v26 = vpop.eup %1782  ;;  %1541 = vmatprep.subr.msk.mxu0 %vm275_vm0, %v758_v28  ;;  %v757_v11 = vadd.f32 %v2475_v16, %v718_v22  ;;  %v678_v12 = vmul.f32 %v1781_v17, %v2372_v44 }
 0x1a0   : > { %v742_v29 = vadd.f32 %v2475_v16, %v703_v25  ;;  %v663_v8 = vmul.f32 %v1783_v26, %v2692_v27 }
 0x1a1   : > { %v717_v55 = vmul.f32 %v2469_v54, %v678_v12 }
 0x1a2   : > { %v1785_v30 = vpop.eup %1784  ;;  %1542 = vmatpush3.xpose.msk.msra.mxu0 %vm275_vm0, %v742_v29  ;;  %v702_v35 = vmul.f32 %v2469_v54, %v663_v8 }
 0x1a3   : > { %v1787_v1 = vpop.eup %1786  ;;  %1543 = vmatprep.subr.msk.mxu0 %vm275_vm0, %v757_v11  ;;  %v756_v33 = vadd.f32 %v2475_v16, %v717_v55  ;;  %v677_v34 = vmul.f32 %v1785_v30, %v2384_v7 }
 0x1a4   : > { %v741_v44 = vadd.f32 %v2475_v16, %v702_v35  ;;  %v662_v0 = vmul.f32 %v1787_v1, %v2376_v39 }
 0x1a5   : > { %v716_v37 = vmul.f32 %v2469_v54, %v677_v34 }
 0x1a6   : > { %v1789_v38 = vpop.eup %1788  ;;  %1544 = vmatpush3.xpose.msk.msra.mxu0 %vm275_vm0, %v741_v44  ;;  %v701_v41 = vmul.f32 %v2469_v54, %v662_v0 }
 0x1a7   : > { %1545 = vmatprep.subr.msk.mxu0 %vm275_vm0, %v756_v33  ;;  %v755_v47 = vadd.f32 %v2475_v16, %v716_v37  ;;  %v661_v42 = vmul.f32 %v1789_v38, %v2388_v15 }
 0x1a8   : > { %v740_v31 = vadd.f32 %v2475_v16, %v701_v41 }
 0x1a9   : > { %v700_v7 = vmul.f32 %v2469_v54, %v661_v42 }
 0x1aa   : > { %1546 = vmatpush3.xpose.msk.msra.mxu0 %vm275_vm0, %v740_v31 }
 0x1ab   : > { %1547 = vmatprep.subr.msk.mxu0 %vm275_vm0, %v755_v47  ;;  %v739_v39 = vadd.f32 %v2475_v16, %v700_v7 }
 0x1ae   : > { %1548 = vmatpush3.xpose.msk.msra.mxu0 %vm275_vm0, %v739_v39 }
 0x1b1   : > { %1550 = vmatmul.mubr.msk.f32.vlgmr.msra.gmra.mxu0 %vm275_vm0, %v2446_v2 }
 0x1be   : > { %v1632_v45 = vpop.f32.mrf.mxu1 }
 0x1c0   : > { %v1108_v19 = vpop.f32.mrf.mxu1 }
 0x1c2   : > { %v1635_v46 = vpop.f32.mrf.mxu1 }
 0x1c4   : > { %v1118_v59 = vpop.f32.mrf.mxu1 }
 0x1c6   : > { %v1638_v15 = vpop.f32.mrf.mxu1 }
 0x1c8   : > { %v1128_v49 = vpop.f32.mrf.mxu1 }
 0x1ca   : > { %v1641_v50 = vpop.f32.mrf.mxu1 }
 0x1cc   : > { %v1138_v53 = vpop.f32.mrf.mxu1 }
 0x1ce   : > { %v1644_v54 = vpop.f32.mrf.mxu1 }
 0x1d0   : > { %v1148_v57 = vpop.f32.mrf.mxu1 }
 0x1d2   : > { %v1647_v58 = vpop.f32.mrf.mxu1 }
 0x1d4   : > { %v1158_v61 = vpop.f32.mrf.mxu1 }
 0x1d6   : > { %v1650_v56 = vpop.f32.mrf.mxu1 }
 0x1d8   : > { %v1168_v63 = vpop.f32.mrf.mxu1 }
 0x1da   : > { %v1653_v16 = vpop.f32.mrf.mxu1 }
 0x1dc   : > { %v1178_v52 = vpop.f32.mrf.mxu1 }
 0x1de   : > { %v1656_v3 = vpop.f32.mrf.mxu1 }
 0x1e0   : > { %v1188_v36 = vpop.f32.mrf.mxu1 }
 0x1e2   : > { %v1659_v51 = vpop.f32.mrf.mxu1 }
 0x1e4   : > { %v1198_v2 = vpop.f32.mrf.mxu1 }
 0x1e6   : > { %v1662_v48 = vpop.f32.mrf.mxu1 }
 0x1e8   : > { %v1208_v23 = vpop.f32.mrf.mxu1 }
 0x1ea   : > { %v1665_v43 = vpop.f32.mrf.mxu1 }
 0x1ec   : > { %v1218_v4 = vpop.f32.mrf.mxu1 }
 0x1ee   : > { %v1668_v24 = vpop.f32.mrf.mxu1 }
 0x1f0   : > { %v1228_v40 = vpop.f32.mrf.mxu1 }
 0x1f2   : > { %v1671_v60 = vpop.f32.mrf.mxu1 }
 0x1f4   : > { %v1238_v32 = vpop.f32.mrf.mxu1 }
 0x1f6   : > { %v1674_v10 = vpop.f32.mrf.mxu1 }
 0x1f8   : > { %v1248_v62 = vpop.f32.mrf.mxu1 }
 0x1fa   : > { %v1677_v14 = vpop.f32.mrf.mxu1 }
 0x1fb   : > { %1587 = vmatprep.subr.mxu1 %v1677_v14 }
 0x1fc   : > { %v1258_v5 = vpop.f32.mrf.mxu1  ;;  %1588 = vmatpush3.msra.mxu1 %v1653_v16 }
 0x1fd   : > { %1589 = vmatprep.subr.mxu1 %v1258_v5 }
 0x1fe   : > { %1590 = vmatpush3.msra.mxu1 %v1178_v52 }
 0x1ff   : > { %1591 = vmatprep.subr.mxu1 %v1674_v10 }
 0x200   : > { %1592 = vmatpush3.msra.mxu1 %v1650_v56 }
 0x201   : > { %1593 = vmatprep.subr.mxu1 %v1248_v62 }
 0x202   : > { %1594 = vmatpush3.msra.mxu1 %v1168_v63 }
 0x203   : > { %1595 = vmatprep.subr.mxu1 %v1671_v60 }
 0x204   : > { %1596 = vmatpush3.msra.mxu1 %v1647_v58 }
 0x205   : > { %1597 = vmatprep.subr.mxu1 %v1238_v32 }
 0x206   : > { %1598 = vmatpush3.msra.mxu1 %v1158_v61 }
 0x207   : > { %1599 = vmatprep.subr.mxu1 %v1668_v24 }
 0x208   : > { %1600 = vmatpush3.msra.mxu1 %v1644_v54 }
 0x209   : > { %1601 = vmatprep.subr.mxu1 %v1228_v40 }
 0x20a   : > { %1602 = vmatpush3.msra.mxu1 %v1148_v57 }
 0x20b   : > { %1603 = vmatprep.subr.mxu1 %v1665_v43 }
 0x20c   : > { %1604 = vmatpush3.msra.mxu1 %v1641_v50 }
 0x20d   : > { %1605 = vmatprep.subr.mxu1 %v1218_v4 }
 0x20e   : > { %1606 = vmatpush3.msra.mxu1 %v1138_v53 }
 0x20f   : > { %1607 = vmatprep.subr.mxu1 %v1662_v48 }
 0x210   : > { %1608 = vmatpush3.msra.mxu1 %v1638_v15 }
 0x211   : > { %1609 = vmatprep.subr.mxu1 %v1208_v23 }
 0x212   : > { %1610 = vmatpush3.msra.mxu1 %v1128_v49 }
 0x213   : > { %1611 = vmatprep.subr.mxu1 %v1659_v51 }
 0x214   : > { %1612 = vmatpush3.msra.mxu1 %v1635_v46 }
 0x215   : > { %1613 = vmatprep.subr.mxu1 %v1198_v2 }
 0x216   : > { %1614 = vmatpush3.msra.mxu1 %v1118_v59 }
 0x217   : > { %1615 = vmatprep.subr.mxu1 %v1656_v3 }
 0x218   : > { %1616 = vmatpush3.msra.mxu1 %v1632_v45 }
 0x219   : > { %1617 = vmatprep.subr.mxu1 %v1188_v36 }
 0x21a   : > { %1618 = vmatpush3.msra.mxu1 %v1108_v19 }
 0x271   : > { %v937_v9 = vpop.f32.mrf.mxu0 }
 0x273   : > { %v939_v28 = vpop.f32.mrf.mxu0 }
 0x274   : > { %v1267_v20 = vmax.f32 %v937_v9, %v939_v28 }
 0x276   : > { %1268 = vmax.xlane.f32.xlu0 %v1267_v20 }
 0x2ff   : > { %v1269_v13 = vpop.xlane.xlu0 %1268 }
 0x300   : > { %v1270_v6 = vsub.f32 %v937_v9, %v1269_v13  ;;  %v1271_v18 = vsub.f32 %v939_v28, %v1269_v13 }
 0x302   : > { %v1272_v21 = vmul.f32 1.442695, %v1270_v6  ;;  %v1274_v22 = vmul.f32 1.442695, %v1271_v18 }
 0x304   : > { %1790 = vpow2.f32 %v1272_v21 }
 0x305   : > { %1792 = vpow2.f32 %v1274_v22 }
 0x311   : > { %v1791_v17 = vpop.eup %1790 }
 0x312   : > { %v1793_v25 = vpop.eup %1792 }
 0x313   : > { %1343 = vmatprep.mubr.f32.mxu1 %v1793_v25  ;;  %v1276_v26 = vadd.f32 %v1793_v25, %v1791_v17 }
 0x314   : > { %1344 = vmatmul.mubr.f32.vlgmr.msra.gmra.mxu1 %v1791_v17 }
 0x315   : > { %1277 = vadd.xlane.f32.xlu1 %v1276_v26 }
 0x39e   : > { %v1278_v11 = vpop.xlane.xlu1 %1277 }
 0x39f   : > { %1794 = vrcp.f32 %v1278_v11 }
 0x3ac   : > { %v1795_v8 = vpop.eup %1794 }
 0x3d4   : > { %v1619_v12 = vpop.f32.mrf.mxu1 }
 0x3d6   : > { %v1620_v29 = vpop.f32.mrf.mxu1 }
 0x3d7   : > { %v1621_v27 = vadd.f32 %v1620_v29, %v1619_v12 }
 0x3d9   : > { %v1350_v55 = vmul.f32 %v1795_v8, %v1621_v27 }
 0x3db   : > { %1351 = vst.msk [vmem:[%s242_s12] sm:$0xff] %vm275_vm0, %v1350_v55 }
 0x3dc   : > { %1837 = shalt.err (!%p1834_p10)
}
 0x3dd   : > { %s1838_s13 = scalar_lea.hbm %s1364_s8, 128  ;;  %s1842_s25 = scalar_lea.hbm %s2648_s5, 256 }
 0x3de   : > { %p1839_p0 = scmp.ne.s32.totalorder %s1364_s8, %s1838_s13  ;;  %p1843_p1 = scmp.lt.s32.totalorder %s1364_s8, %s2648_s5 }
 0x3df   : > { %p1844_p3 = scmp.lt.s32.totalorder %s1842_s25, %s1838_s13 }
 0x3e0   : > { %p1840_p2 = pnand %p1839_p0, %p2693_p12 }
 0x3e1   : > { %p1845_p6 = por %p1844_p3, %p1843_p1 }
 0x3e2   : > { %p1841_p9 = pneg %p1840_p2 }
 0x3e4   : > { %p1846_p11 = pnand %p1845_p6, %p1841_p9 }
 0x3e6   : > { %1849 = shalt.err (!%p1846_p11)
}
 0x3e7   : > { %1680 = dma.vmem_to_hbm [thread:$0]  (%p2693_p12), %s1367_s14, 128, %s1364_s8, %s1353_s7  }
 0x3e8 PF: > { %s1378_s29 = sand.u32 1, %s1876_s18   ;;  %p2694_p13 = scmp.ne.s32.totalorder %s2666_s6, 0 }
 0x3e9   : > { %p2695_p4 = scmp.ge.s32.totalorder %s1888_s21, 2  ;;  %s1379_s12 = scalar_lea.sflag [#allocation4], %s1378_s29 }
 0x3eb   : > { %p1687_p5 = pnand %p2695_p4, %p2694_p13 }
 0x3ed   : > { %p1688_p7 = pneg %p1687_p5 }
 0x3ef   : > { %1871 = dma.done.wait (%p1688_p7), %s1379_s12, 128  }
 0x3f0   : > { %1873 = vsyncadd (%p1688_p7), %s1379_s12, 4294967168  ;;  %p18_p8 = scmp.ge.s32.totalorder %s1949_s24, 4   ;;  %s2696_s18 = smov %s1880_s19 }
 0x3f1   : > { %s2697_s19 = smov %s1884_s20  ;;  %s2698_s20 = smov %s1961_s27 }
 0x3f2   : > { %s2699_s21 = smov %s1949_s24  ;;  %20 = sbr.rel (!%p18_p8) target bundleno = 5 (0x5), region = 85 }
 0x3f7   :  { %1384 = vsyncpa [#allocation3], 1 }
 0x3f8   :  { %1386 = vsyncpa [#allocation3 + $0x1], 1 }
 0x3f9   :  { %1387 = vsyncpa [#allocation4], 1 }
 0x3fa   :  { %1389 = vsyncpa [#allocation4 + $0x1], 1 }

</bundles_post_ra>
